<compile_context>
chip_gen: v7x
topology: tpu7x:2x2x1
jax: 0.10.0
libtpu: 0.0.40
codegen_flags: <defaults>
</compile_context>

<pallas_src>
import functools

import jax
import jax.numpy as jnp
import numpy as np
from jax import lax
from jax.experimental import pallas as pl
from jax.experimental.pallas import tpu as pltpu

# ----------------------------- config ---------------------------------------
BATCH = 2
SEQ = 8                   # user sequence length
NUM_VIRTUAL_TOKENS = 8    # peft_config.num_virtual_tokens (num_transformer_submodules = 1)
HIDDEN = 128              # token_dim
VOCAB = 256               # base_model.config.vocab_size
TOTAL_T = NUM_VIRTUAL_TOKENS + SEQ
VT_PAD = 512              # combined [prompt ; word] table rows, padded to 2x256 MXU K


# ------------------- fused Pallas kernel: gather + LM head -------------------
def _fused_peft_lm_kernel(ids_ref, table_ref, w_ref, o_ref, *, nvt, vocab, total_t):
    # ids_ref:   VMEM (M, 1)  int32   RAW ids: prompt slots carry arange(nvt),
    #                                 word slots carry raw input_ids (unclamped, un-offset)
    # table_ref: VMEM (Vt, H) bf16    [prompt_emb ; word_emb ; zero pad], Vt lane-aligned
    # w_ref:     VMEM (H, V)  bf16    synthetic LM head
    # o_ref:     VMEM (M, V)  f32     logits (lane-dense, single unmasked store)
    M = o_ref.shape[0]
    Vt = table_ref.shape[0]

    raw = ids_ref[...]                                          # (M, 1) int32

    # Fold the clamp and '+nvt' table offset into the kernel (VPU; hides under MXU work).
    row = lax.broadcasted_iota(jnp.int32, (M, 1), 0)            # flat row index b*T + t
    pos = lax.rem(row, total_t)                                 # position within sequence
    word_ids = jnp.clip(raw, 0, vocab - 1) + nvt                # bounds-safe word-table rows
    ids = jnp.where(pos < nvt, raw, word_ids)                   # prompt rows keep raw arange

    col = lax.broadcasted_iota(jnp.int32, (M, Vt), 1)           # (M, Vt)
    onehot = (col == ids).astype(table_ref.dtype)               # (M, Vt) bf16 {0,1}

    # MXU gather: one-hot @ table selects rows exactly; f32 accumulation.
    emb = jnp.dot(onehot, table_ref[...],
                  preferred_element_type=jnp.float32)           # (M, H) f32 (== bf16 rows)

    # Synthetic base_model hot path: hidden -> vocab logits (bf16 MXU, f32 accumulate).
    o_ref[...] = jnp.dot(emb.astype(w_ref.dtype), w_ref[...],
                         preferred_element_type=jnp.float32)    # (M, V) f32


def fused_prompt_lm(raw_ids, table, w, *, nvt, vocab):
    """raw_ids: (B, T) int32 (prompt slots = arange(nvt), word slots = raw token ids);
    table: (Vt, H) bf16 combined padded table; w: (H, V) bf16 -> logits (B, T, V) f32."""
    B, T = raw_ids.shape
    Vt, H = table.shape
    Hw, V = w.shape
    assert Hw == H
    M = B * T
    # Lane/sublane/MXU alignment sanity — now including the padded table row count Vt.
    assert M % 8 == 0 and H % 128 == 0 and V % 128 == 0 and Vt % 128 == 0, (M, H, V, Vt)

    ids2 = raw_ids.reshape(M, 1).astype(jnp.int32)
    kernel = functools.partial(
        _fused_peft_lm_kernel, nvt=nvt, vocab=vocab, total_t=T)
    out = pl.pallas_call(
        kernel,
        out_shape=jax.ShapeDtypeStruct((M, V), jnp.float32),
        in_specs=[
            pl.BlockSpec(memory_space=pltpu.MemorySpace.VMEM),   # ids
            pl.BlockSpec(memory_space=pltpu.MemorySpace.VMEM),   # combined padded table
            pl.BlockSpec(memory_space=pltpu.MemorySpace.VMEM),   # lm head weight
        ],
        out_specs=pl.BlockSpec(memory_space=pltpu.MemorySpace.VMEM),
    )(ids2, table, w)
    return out.reshape(B, T, V)


# ----------------------- PeftModelForCausalLM forward -----------------------
def init_params(key):
    k1, k2, k3 = jax.random.split(key, 3)
    prompt_emb = (jax.random.normal(k1, (NUM_VIRTUAL_TOKENS, HIDDEN), jnp.float32)
                  * 0.02).astype(jnp.bfloat16)
    word_emb = (jax.random.normal(k2, (VOCAB, HIDDEN), jnp.float32)
                * 0.02).astype(jnp.bfloat16)
    lm_w = (jax.random.normal(k3, (HIDDEN, VOCAB), jnp.float32)
            * 0.02).astype(jnp.bfloat16)
    # Combined [prompt ; word] table built + zero-padded to VT_PAD rows ONCE here.
    emb_table = jnp.concatenate([prompt_emb, word_emb], axis=0)        # (nvt + V, H)
    pad_rows = VT_PAD - emb_table.shape[0]
    assert pad_rows >= 0
    emb_table = jnp.concatenate(
        [emb_table, jnp.zeros((pad_rows, HIDDEN), jnp.bfloat16)], axis=0)  # (VT_PAD, H)
    return {
        "prompt_emb": prompt_emb,   # PromptEmbedding.embedding
        "word_emb": word_emb,       # transformer word embeddings
        "emb_table": emb_table,     # precomputed combined, lane-aligned table
        "lm_w": lm_w,               # synthetic base-model LM head
    }


@jax.jit
def _peft_forward_jit(params, input_ids, attention_mask, labels):
    B, S = input_ids.shape
    nvt = NUM_VIRTUAL_TOKENS

    # prefix attention mask: torch.cat((ones(B, nvt), attention_mask), dim=1)
    attention_mask = jnp.concatenate(
        [jnp.ones((B, nvt), attention_mask.dtype), attention_mask], axis=1)

    # prefix labels with -100: torch.cat((full((B, nvt), -100), labels), dim=1)
    labels = jnp.concatenate(
        [jnp.full((B, nvt), -100, labels.dtype), labels], axis=1)

    # Raw ids: prompt slots carry arange(nvt); word slots carry raw input_ids.
    # The clamp and '+nvt' table offset happen inside the kernel.
    prompt_ids = jnp.broadcast_to(jnp.arange(nvt, dtype=jnp.int32), (B, nvt))
    raw_ids = jnp.concatenate([prompt_ids, input_ids.astype(jnp.int32)], axis=1)  # (B, T)

    # Single fused kernel: prompt+word embedding gather, implicit seq concat, LM head.
    logits = fused_prompt_lm(raw_ids, params["emb_table"], params["lm_w"],
                             nvt=nvt, vocab=VOCAB)                                 # (B, T, V)
    return logits, attention_mask, labels


def peft_causal_lm_forward(params, input_ids, attention_mask=None, labels=None):
    B, S = input_ids.shape
    if attention_mask is None:
        attention_mask = jnp.ones((B, S), jnp.int32)
    if labels is None:
        labels = jnp.full((B, S), -100, jnp.int32)
    return _peft_forward_jit(params, input_ids, attention_mask, labels)


# ----------------------------------- main ------------------------------------
if __name__ == "__main__":
    key = jax.random.PRNGKey(0)
    params = init_params(key)

    k_ids = jax.random.fold_in(key, 1)
    input_ids = jax.random.randint(k_ids, (BATCH, SEQ), 0, VOCAB, dtype=jnp.int32)
    attention_mask = jnp.ones((BATCH, SEQ), jnp.int32)
    labels = input_ids

    logits, att_mask, out_labels = peft_causal_lm_forward(
        params, input_ids, attention_mask=attention_mask, labels=labels)
    logits = jax.block_until_ready(logits)

    # pure-JAX reference check
    prompt_ids = jnp.broadcast_to(jnp.arange(NUM_VIRTUAL_TOKENS, dtype=jnp.int32),
                                  (BATCH, NUM_VIRTUAL_TOKENS))
    word_ids_ref = jnp.clip(input_ids, 0, VOCAB - 1) + NUM_VIRTUAL_TOKENS
    ids_ref = jnp.concatenate([prompt_ids, word_ids_ref], axis=1)
    emb_ref = jnp.take(params["emb_table"], ids_ref, axis=0)              # (B, T, H) bf16
    logits_ref = jnp.einsum("bth,hv->btv", emb_ref, params["lm_w"],
                            preferred_element_type=jnp.float32)

    assert logits.shape == (BATCH, TOTAL_T, VOCAB)
    assert att_mask.shape == (BATCH, TOTAL_T)
    assert out_labels.shape == (BATCH, TOTAL_T)
    assert bool(jnp.all(out_labels[:, :NUM_VIRTUAL_TOKENS] == -100))
    np.testing.assert_allclose(np.asarray(logits), np.asarray(logits_ref),
                               rtol=1e-3, atol=1e-5)
    print("KERNEL_OK")
</pallas_src>

<mosaic_0001>
module attributes {stable_mosaic.version = 11 : i64} {
  func.func @_fused_peft_lm_kernel(%arg0: memref<32x1xi32, #tpu.memory_space<vmem>>, %arg1: memref<512x128xbf16, #tpu.memory_space<vmem>>, %arg2: memref<128x256xbf16, #tpu.memory_space<vmem>>, %arg3: memref<32x256xf32, #tpu.memory_space<vmem>>) attributes {dimension_semantics = [], scalar_prefetch = 0 : i64, scratch_operands = 0 : i64, tpu.core_type = #tpu.core_type<tc>} {
    %c0 = arith.constant 0 : index
    %c0_0 = arith.constant 0 : index
    %0 = vector.load %arg0[%c0, %c0_0] : memref<32x1xi32, #tpu.memory_space<vmem>>, vector<32x1xi32>
    %1 = tpu.iota {dimensions = array<i32: 0>} : vector<32x1xi32>
    %c16_i32 = arith.constant 16 : i32
    %2 = vector.broadcast %c16_i32 : i32 to vector<32x1xi32>
    %3 = arith.remsi %1, %2 : vector<32x1xi32>
    %c0_i32 = arith.constant 0 : i32
    %c255_i32 = arith.constant 255 : i32
    %4 = vector.broadcast %c0_i32 : i32 to vector<32x1xi32>
    %5 = arith.maxsi %4, %0 : vector<32x1xi32>
    %6 = vector.broadcast %c255_i32 : i32 to vector<32x1xi32>
    %7 = arith.minsi %6, %5 : vector<32x1xi32>
    %c8_i32 = arith.constant 8 : i32
    %8 = vector.broadcast %c8_i32 : i32 to vector<32x1xi32>
    %9 = arith.addi %7, %8 : vector<32x1xi32>
    %c8_i32_1 = arith.constant 8 : i32
    %10 = vector.broadcast %c8_i32_1 : i32 to vector<32x1xi32>
    %11 = arith.cmpi slt, %3, %10 : vector<32x1xi32>
    %12 = arith.select %11, %0, %9 : vector<32x1xi1>, vector<32x1xi32>
    %13 = tpu.iota {dimensions = array<i32: 1>} : vector<32x512xi32>
    %14 = vector.broadcast %12 : vector<32x1xi32> to vector<32x512xi32>
    %15 = arith.cmpi eq, %13, %14 : vector<32x512xi32>
    %16 = arith.extui %15 : vector<32x512xi1> to vector<32x512xi32>
    %17 = arith.sitofp %16 : vector<32x512xi32> to vector<32x512xf32>
    %18 = arith.truncf %17 : vector<32x512xf32> to vector<32x512xbf16>
    %c0_2 = arith.constant 0 : index
    %c0_3 = arith.constant 0 : index
    %19 = vector.load %arg1[%c0_2, %c0_3] : memref<512x128xbf16, #tpu.memory_space<vmem>>, vector<512x128xbf16>
    %cst = arith.constant dense<0.000000e+00> : vector<32x128xf32>
    %20 = tpu.matmul %18, %19, %cst {dimension_numbers = #tpu.dot_dimension_numbers<[1], [0], [0], [1], [0, 0, 1, 1], [], []>} : vector<32x512xbf16>, vector<512x128xbf16>, vector<32x128xf32> -> vector<32x128xf32>
    %21 = arith.truncf %20 : vector<32x128xf32> to vector<32x128xbf16>
    %c0_4 = arith.constant 0 : index
    %c0_5 = arith.constant 0 : index
    %22 = vector.load %arg2[%c0_4, %c0_5] : memref<128x256xbf16, #tpu.memory_space<vmem>>, vector<128x256xbf16>
    %cst_6 = arith.constant dense<0.000000e+00> : vector<32x256xf32>
    %23 = tpu.matmul %21, %22, %cst_6 {dimension_numbers = #tpu.dot_dimension_numbers<[1], [0], [0], [1], [0, 0, 1, 1], [], []>} : vector<32x128xbf16>, vector<128x256xbf16>, vector<32x256xf32> -> vector<32x256xf32>
    %c0_7 = arith.constant 0 : index
    %c0_8 = arith.constant 0 : index
    %24 = vector.load %arg3[%c0_7, %c0_8] : memref<32x256xf32, #tpu.memory_space<vmem>>, vector<32x256xf32>
    tpu.vector_store %arg3[%c0_7, %c0_8], %23 {strides = array<i32>} : memref<32x256xf32, #tpu.memory_space<vmem>>, vector<32x256xf32>,
    return
  }
}

</mosaic_0001>

<bundles_post_ra>
// kernel: _peft_forward_jit.1
= control target key start
LH: loop header
LB: loop body
LE: loop exit
PB: predicated region body
PF: predicated region fallthrough
CT: control target
= control target key end

     0   :  { %8 = vsyncpa [#allocation3], 0  ;;  %s1091_s0 = inlined_call_operand.vmem [shape: s32[32,1], index: 0, kind: input, shape index: {}]   ;;  %s1092_s1 = inlined_call_operand.hbm [shape: bf16[512,128], index: 1, kind: input, shape index: {}]   ;;  %s1093_s2 = inlined_call_operand.hbm [shape: bf16[128,256], index: 2, kind: input, shape index: {}]   ;;  %s1094_s3 = inlined_call_operand.hbm [shape: f32[32,256], index: 3, kind: output, shape index: {}]  }
   0x1   :  { %9 = vsyncpa [#allocation6], 0 }
   0x2   :  { %10 = vsyncpa [#allocation4], 0  ;;  %s1006_s12 = smov [#allocation2]   ;;  %s934_s16 = scalar_lea.hbm %s1092_s1, 4096 }
   0x3   :  { %s18_s13 = sshll.u32 %s1006_s12, 4  ;;  %p935_p0 = scmp.ne.s32.totalorder %s1092_s1, %s934_s16  ;;  %s19_s13 = int_to_ptr.vmem [resolvable:$true] %s18_s13 }
   0x4   :  { %p938_p1 = scmp.lt.u32.totalorder %s934_s16, %s1092_s1 }
   0x6   :  { %p940_p2 = pnand %p938_p1, %p935_p0 }
   0x8   :  { %943 = shalt.err (!%p940_p2)
}
   0x9   :  { %s944_s21 = scalar_lea.vmem %s19_s13, 4096  ;;  %p949_p4 = scmp.lt.s32.totalorder %s19_s13, %s19_s13 }
   0xa   :  { %p945_p3 = scmp.ne.s32.totalorder %s19_s13, %s944_s21  ;;  %p950_p5 = scmp.lt.s32.totalorder %s944_s21, %s944_s21 }
   0xc   :  { %p951_p6 = por %p950_p5, %p949_p4 }
   0xe   :  { %p952_p7 = pnand %p951_p6, %p945_p3 }
  0x10   :  { %955 = shalt.err (!%p952_p7)
}
  0x11   :  { %s1007_s22 = smov 64   ;;  %s1008_s23 = smov 4  }
  0x12   :  { %24 = dma.hbm_to_vmem [thread:$0]  %s1092_s1, 4096, %s19_s13, [#allocation3], %s1007_s22, %s1007_s22, %s1008_s23  }
  0x13   :  { %s1009_s26 = smov [#allocation5]   ;;  %s956_s30 = scalar_lea.hbm %s1093_s2, 2048 }
  0x14   :  { %s30_s27 = sshll.u32 %s1009_s26, 4  ;;  %p957_p8 = scmp.ne.s32.totalorder %s1093_s2, %s956_s30  ;;  %s31_s27 = int_to_ptr.vmem [resolvable:$true] %s30_s27 }
  0x15   :  { %p960_p9 = scmp.lt.u32.totalorder %s956_s30, %s1093_s2 }
  0x17   :  { %p962_p10 = pnand %p960_p9, %p957_p8 }
  0x19   :  { %965 = shalt.err (!%p962_p10)
}
  0x1a   :  { %s966_s8 = scalar_lea.vmem %s31_s27, 2048  ;;  %p971_p12 = scmp.lt.s32.totalorder %s31_s27, %s31_s27 }
  0x1b   :  { %p967_p11 = scmp.ne.s32.totalorder %s31_s27, %s966_s8  ;;  %p972_p13 = scmp.lt.s32.totalorder %s966_s8, %s966_s8 }
  0x1d   :  { %p973_p0 = por %p972_p13, %p971_p12 }
  0x1f   :  { %p974_p1 = pnand %p973_p0, %p967_p11 }
  0x21   :  { %977 = shalt.err (!%p974_p1)
}
  0x22   :  { %s1010_s1 = smov 128   ;;  %s1011_s9 = smov 8  }
  0x23   :  { %36 = dma.hbm_to_vmem [thread:$0]  %s1093_s2, 2048, %s31_s27, [#allocation6], %s1010_s1, %s1010_s1, %s1011_s9  }
  0x24   :  { %1000 = dma.done.wait [#allocation3], 4096  }
  0x25   :  { %1001 = vsyncadd [#allocation3], 4294963200 }
  0x26   :  { %1002 = dma.done.wait [#allocation6], 2048  }
  0x27   :  { %1003 = vsyncadd [#allocation6], 4294965248  ;;  %v1012_v0 = vmov 0   ;;  %v44_v1 = vld [vmem:[%s1091_s0] sm:$0xff]  ;;  %v46_v2 = vld [vmem:[%s1091_s0 + $0x10] sm:$0xff]  ;;  %v109_v44 = vlaneseq }
  0x28   :  { %876 = vset.pattern.permute.xlu0 %v1012_v0  ;;  %877 = vset.pattern.permute.xlu1 %v1012_v0  ;;  %v45_v3 = vld [vmem:[%s1091_s0 + $0x8] sm:$0xff]  ;;  %v47_v4 = vld [vmem:[%s1091_s0 + $0x18] sm:$0xff]  ;;  %v878_v6 = vld [vmem:[#allocation2 + $0x40] sm:$0xff]   ;;  %v1013_v54 = vmov 1.0|1.0   ;;  %s1014_s0 = smov [#allocation7]  }
  0x29   :  { %115 = vperm.xlu0 %876, %v44_v1   ;;  %121 = vperm.xlu1 %877, %v46_v2   ;;  %vm83_vm0 = vcmp.gt.s32.totalorder %v45_v3, 0  ;;  %vm87_vm1 = vcmp.gt.s32.totalorder %v47_v4, 0  ;;  %v879_v7 = vld [vmem:[#allocation2 + $0xc0] sm:$0xff]   ;;  %v882_v15 = vld [vmem:[#allocation2 + $0x48] sm:$0xff]   ;;  %v886_v19 = vld [vmem:[#allocation2 + $0x50] sm:$0xff]   ;;  %v110_v45 = vand.u32 127, %v109_v44 }
  0x2a   :  { %v84_v5 = vsel %vm83_vm0, %v45_v3, 0  ;;  %v88_v8 = vsel %vm87_vm1, %v47_v4, 0  ;;  %793 = vmatprep.subr.bf16.mxu0 %v878_v6  ;;  %821 = vmatprep.subr.bf16.mxu1 %v879_v7  ;;  %v880_v10 = vld [vmem:[#allocation2] sm:$0xff]   ;;  %v883_v16 = vld [vmem:[#allocation2 + $0xc8] sm:$0xff]   ;;  %v887_v20 = vld [vmem:[#allocation2 + $0xd0] sm:$0xff]   ;;  %s700_s19 = sshll.u32 %s1014_s0, 4  ;;  %s701_s19 = int_to_ptr.vmem [resolvable:$true] %s700_s19 }
  0x2b   :  { %vm91_vm2 = vcmp.lt.s32.totalorder %v84_v5, 255  ;;  %vm95_vm3 = vcmp.lt.s32.totalorder %v88_v8, 255  ;;  %v881_v11 = vld [vmem:[#allocation2 + $0x80] sm:$0xff]   ;;  %794 = vmatpush3.bf16.msra.mxu0 %v880_v10  ;;  %v884_v17 = vld [vmem:[#allocation2 + $0x8] sm:$0xff]   ;;  %v888_v21 = vld [vmem:[#allocation2 + $0x10] sm:$0xff]   ;;  %v111_v48 = vadd.s32 128, %v110_v45  ;;  %p983_p3 = scmp.lt.s32.totalorder %s701_s19, %s701_s19 }
  0x2c   :  { %v92_v9 = vsel %vm91_vm2, %v84_v5, 255  ;;  %v96_v13 = vsel %vm95_vm3, %v88_v8, 255  ;;  %822 = vmatpush3.bf16.msra.mxu1 %v881_v11  ;;  %795 = vmatprep.subr.bf16.mxu0 %v882_v15  ;;  %v885_v18 = vld [vmem:[#allocation2 + $0x88] sm:$0xff]   ;;  %v889_v22 = vld [vmem:[#allocation2 + $0x90] sm:$0xff]   ;;  %v890_v23 = vld [vmem:[#allocation2 + $0x58] sm:$0xff]   ;;  %v113_v49 = vadd.s32 384, %v110_v45 }
  0x2d   :  { %v98_v12 = vadd.s32 8, %v92_v9  ;;  %v100_v14 = vadd.s32 8, %v96_v13  ;;  %823 = vmatprep.subr.bf16.mxu1 %v883_v16  ;;  %v891_v24 = vld [vmem:[#allocation2 + $0xd8] sm:$0xff]   ;;  %v894_v27 = vld [vmem:[#allocation2 + $0x60] sm:$0xff]   ;;  %v898_v31 = vld [vmem:[#allocation2 + $0x68] sm:$0xff]   ;;  %v112_v50 = vadd.s32 256, %v110_v45 }
  0x2e   :  { %v892_v25 = vld [vmem:[#allocation2 + $0x18] sm:$0xff]   ;;  %v895_v28 = vld [vmem:[#allocation2 + $0xe0] sm:$0xff]   ;;  %v899_v32 = vld [vmem:[#allocation2 + $0xe8] sm:$0xff]   ;;  %s978_s20 = scalar_lea.vmem %s701_s19, 1024 }
  0x2f   :  { %118 = vperm.xlu0 %876, %v98_v12   ;;  %124 = vperm.xlu1 %877, %v100_v14   ;;  %v893_v26 = vld [vmem:[#allocation2 + $0x98] sm:$0xff]   ;;  %v896_v29 = vld [vmem:[#allocation2 + $0x20] sm:$0xff]   ;;  %v900_v33 = vld [vmem:[#allocation2 + $0x28] sm:$0xff]   ;;  %p979_p2 = scmp.ne.s32.totalorder %s701_s19, %s978_s20  ;;  %p984_p4 = scmp.lt.s32.totalorder %s978_s20, %s978_s20 }
  0x30   :  { %796 = vmatpush3.bf16.msra.mxu0 %v884_v17  ;;  %824 = vmatpush3.bf16.msra.mxu1 %v885_v18  ;;  %v897_v30 = vld [vmem:[#allocation2 + $0xa0] sm:$0xff]   ;;  %v901_v34 = vld [vmem:[#allocation2 + $0xa8] sm:$0xff]   ;;  %v902_v35 = vld [vmem:[#allocation2 + $0x70] sm:$0xff]  }
  0x31   :  { %797 = vmatprep.subr.bf16.mxu0 %v886_v19  ;;  %825 = vmatprep.subr.bf16.mxu1 %v887_v20  ;;  %v903_v36 = vld [vmem:[#allocation2 + $0xf0] sm:$0xff]   ;;  %v906_v39 = vld [vmem:[#allocation2 + $0x78] sm:$0xff]   ;;  %v912_v43 = vld [vmem:[#allocation5 + $0x4] ss:$8 sps:$4 sm:$0xff]   ;;  %p985_p5 = por %p984_p4, %p983_p3 }
  0x32   :  { %v904_v37 = vld [vmem:[#allocation2 + $0x30] sm:$0xff]   ;;  %v907_v40 = vld [vmem:[#allocation2 + $0xf8] sm:$0xff]   ;;  %v910_v53 = vld [vmem:[#allocation5] ss:$8 sps:$4 sm:$0xff]  }
  0x33   :  { %v905_v38 = vld [vmem:[#allocation2 + $0xb0] sm:$0xff]   ;;  %v908_v41 = vld [vmem:[#allocation2 + $0x38] sm:$0xff]   ;;  %v918_v57 = vld [vmem:[#allocation5 + $0x24] ss:$8 sps:$4 sm:$0xff]   ;;  %p986_p6 = pnand %p985_p5, %p979_p2 }
  0x34   :  { %798 = vmatpush3.bf16.msra.mxu0 %v888_v21  ;;  %826 = vmatpush3.bf16.msra.mxu1 %v889_v22  ;;  %v909_v42 = vld [vmem:[#allocation2 + $0xb8] sm:$0xff]   ;;  %v916_v58 = vld [vmem:[#allocation5 + $0x20] ss:$8 sps:$4 sm:$0xff]   ;;  %v924_v61 = vld [vmem:[#allocation5 + $0x44] ss:$8 sps:$4 sm:$0xff]  }
  0x35   :  { %799 = vmatprep.subr.bf16.mxu0 %v890_v23  ;;  %827 = vmatprep.subr.bf16.mxu1 %v891_v24  ;;  %v915_v55 = vld [vmem:[#allocation5 + $0x14] ss:$8 sps:$4 sm:$0xff]   ;;  %v913_v56 = vld [vmem:[#allocation5 + $0x10] ss:$8 sps:$4 sm:$0xff]   ;;  %v922_v62 = vld [vmem:[#allocation5 + $0x40] ss:$8 sps:$4 sm:$0xff]  }
  0x36   :  { %v921_v59 = vld [vmem:[#allocation5 + $0x34] ss:$8 sps:$4 sm:$0xff]   ;;  %v919_v60 = vld [vmem:[#allocation5 + $0x30] ss:$8 sps:$4 sm:$0xff]   ;;  %v930_v2 = vld [vmem:[#allocation5 + $0x64] ss:$8 sps:$4 sm:$0xff]  }
  0x37   :  { %v927_v63 = vld [vmem:[#allocation5 + $0x54] ss:$8 sps:$4 sm:$0xff]   ;;  %v925_v1 = vld [vmem:[#allocation5 + $0x50] ss:$8 sps:$4 sm:$0xff]   ;;  %v928_v3 = vld [vmem:[#allocation5 + $0x60] ss:$8 sps:$4 sm:$0xff]  }
  0x38   :  { %800 = vmatpush3.bf16.msra.mxu0 %v892_v25  ;;  %828 = vmatpush3.bf16.msra.mxu1 %v893_v26  ;;  %v931_v4 = vld [vmem:[#allocation5 + $0x70] ss:$8 sps:$4 sm:$0xff]  }
  0x39   :  { %801 = vmatprep.subr.bf16.mxu0 %v894_v27  ;;  %829 = vmatprep.subr.bf16.mxu1 %v895_v28 }
  0x3c   :  { %802 = vmatpush3.bf16.msra.mxu0 %v896_v29  ;;  %830 = vmatpush3.bf16.msra.mxu1 %v897_v30 }
  0x3d   :  { %803 = vmatprep.subr.bf16.mxu0 %v898_v31  ;;  %831 = vmatprep.subr.bf16.mxu1 %v899_v32 }
  0x40   :  { %804 = vmatpush3.bf16.msra.mxu0 %v900_v33  ;;  %832 = vmatpush3.bf16.msra.mxu1 %v901_v34 }
  0x41   :  { %805 = vmatprep.subr.bf16.mxu0 %v902_v35  ;;  %833 = vmatprep.subr.bf16.mxu1 %v903_v36 }
  0x44   :  { %806 = vmatpush3.bf16.msra.mxu0 %v904_v37  ;;  %834 = vmatpush3.bf16.msra.mxu1 %v905_v38 }
  0x45   :  { %807 = vmatprep.subr.bf16.mxu0 %v906_v39  ;;  %835 = vmatprep.subr.bf16.mxu1 %v907_v40 }
  0x48   :  { %808 = vmatpush3.bf16.msra.mxu0 %v908_v41  ;;  %836 = vmatpush3.bf16.msra.mxu1 %v909_v42 }
  0x49   :  { %634 = vmatprep.subr.bf16.mxu0 %v912_v43  ;;  %849 = vmatprep.subr.bf16.mxu1 %v912_v43 }
  0xa8   :  { %v116_v46 = vpop.permute.xlu0 %115  ;;  %v122_v47 = vpop.permute.xlu1 %121 }
  0xa9   :  { %vm127_vm5 = vcmp.eq.s32.totalorder %v111_v48, %v116_v46  ;;  %vm129_vm10 = vcmp.eq.s32.totalorder %v113_v49, %v116_v46  ;;  %vm126_vm13 = vcmp.eq.s32.totalorder %v110_v45, %v116_v46  ;;  %vm135_vm14 = vcmp.eq.s32.totalorder %v111_v48, %v122_v47 }
  0xaa   :  { %vm128_vm1 = vcmp.eq.s32.totalorder %v112_v50, %v116_v46  ;;  %vm137_vm2 = vcmp.eq.s32.totalorder %v113_v49, %v122_v47 }
  0xae   :  { %v119_v51 = vpop.permute.xlu0 %118  ;;  %v125_v52 = vpop.permute.xlu1 %124 }
  0xaf   :  { %vm130_vm4 = vcmp.eq.s32.totalorder %v110_v45, %v119_v51  ;;  %vm131_vm6 = vcmp.eq.s32.totalorder %v111_v48, %v119_v51  ;;  %vm133_vm7 = vcmp.eq.s32.totalorder %v113_v49, %v119_v51  ;;  %vm132_vm8 = vcmp.eq.s32.totalorder %v112_v50, %v119_v51 }
  0xb0   :  { %vm761_vm9 = vmpackc.low %vm131_vm6, %vm127_vm5  ;;  %vm139_vm12 = vcmp.eq.s32.totalorder %v111_v48, %v125_v52  ;;  %vm141_vm15 = vcmp.eq.s32.totalorder %v113_v49, %v125_v52 }
  0xb1   :  { %762 = vmatprep.mubr.msk.bf16.mxu0 %vm761_vm9, %v1013_v54  ;;  %vm769_vm11 = vmpackc.low %vm133_vm7, %vm129_vm10  ;;  %vm138_vm7 = vcmp.eq.s32.totalorder %v110_v45, %v125_v52  ;;  %vm134_vm9 = vcmp.eq.s32.totalorder %v110_v45, %v122_v47  ;;  %vm140_vm10 = vcmp.eq.s32.totalorder %v112_v50, %v125_v52 }
  0xb2   :  { %770 = vmatprep.mubr.msk.bf16.mxu1 %vm769_vm11, %v1013_v54  ;;  %vm763_vm0 = vmpackc.low %vm130_vm4, %vm126_vm13  ;;  %vm136_vm4 = vcmp.eq.s32.totalorder %v112_v50, %v122_v47 }
  0xb3   :  { %764 = vmatmul.mubr.msk.bf16.vlgmr.msra.gmra.mrb[0].mxu0 %vm763_vm0, %v1013_v54  ;;  %vm771_vm3 = vmpackc.low %vm132_vm8, %vm128_vm1 }
  0xb4   :  { %772 = vmatmul.mubr.msk.bf16.vlgmr.msra.gmra.mrb[0].mxu1 %vm771_vm3, %v1013_v54  ;;  %vm765_vm5 = vmpackc.low %vm139_vm12, %vm135_vm14  ;;  %635 = vmatpush1.bf16.msra.mxu0 %v910_v53 }
  0xb5   :  { %766 = vmatprep.mubr.msk.bf16.mxu0 %vm765_vm5, %v1013_v54  ;;  %vm773_vm6 = vmpackc.low %vm141_vm15, %vm137_vm2  ;;  %636 = vmatprep.subr.bf16.mxu0 %v915_v55 }
  0xb6   :  { %774 = vmatprep.mubr.msk.bf16.mxu1 %vm773_vm6, %v1013_v54  ;;  %857 = vmatpush1.bf16.msra.mxu1 %v910_v53  ;;  %vm767_vm8 = vmpackc.low %vm138_vm7, %vm134_vm9 }
  0xb7   :  { %850 = vmatprep.subr.bf16.mxu1 %v915_v55  ;;  %vm775_vm11 = vmpackc.low %vm140_vm10, %vm136_vm4 }
  0xb8   :  { %637 = vmatpush1.bf16.msra.mxu0 %v913_v56 }
  0xb9   :  { %638 = vmatprep.subr.bf16.mxu0 %v918_v57 }
  0xba   :  { %858 = vmatpush1.bf16.msra.mxu1 %v913_v56 }
  0xbb   :  { %768 = vmatmul.mubr.msk.bf16.gmra.mrb[4].mxu0 %vm767_vm8, %v1013_v54  ;;  %851 = vmatprep.subr.bf16.mxu1 %v918_v57 }
  0xbc   :  { %776 = vmatmul.mubr.msk.bf16.gmra.mrb[4].mxu1 %vm775_vm11, %v1013_v54  ;;  %639 = vmatpush1.bf16.msra.mxu0 %v916_v58 }
  0xbd   :  { %640 = vmatprep.subr.bf16.mxu0 %v921_v59  ;;  %666 = vmatprep.mubr.bf16.mxu0 %v1012_v0 }
  0xbe   :  { %859 = vmatpush1.bf16.msra.mxu1 %v916_v58  ;;  %676 = vmatprep.mubr.bf16.mxu1 %v1012_v0  ;;  %v933_v0 = vld [vmem:[#allocation5 + $0x74] ss:$8 sps:$4 sm:$0xff]  }
  0xbf   :  { %852 = vmatprep.subr.bf16.mxu1 %v921_v59 }
  0xc0   :  { %641 = vmatpush1.bf16.msra.mxu0 %v919_v60 }
  0xc1   :  { %642 = vmatprep.subr.bf16.mxu0 %v924_v61 }
  0xc2   :  { %860 = vmatpush1.bf16.msra.mxu1 %v919_v60 }
  0xc3   :  { %853 = vmatprep.subr.bf16.mxu1 %v924_v61 }
  0xc4   :  { %643 = vmatpush1.bf16.msra.mxu0 %v922_v62 }
  0xc5   :  { %644 = vmatprep.subr.bf16.mxu0 %v927_v63 }
  0xc6   :  { %861 = vmatpush1.bf16.msra.mxu1 %v922_v62 }
  0xc7   :  { %854 = vmatprep.subr.bf16.mxu1 %v927_v63 }
  0xc8   :  { %645 = vmatpush1.bf16.msra.mxu0 %v925_v1 }
  0xc9   :  { %646 = vmatprep.subr.bf16.mxu0 %v930_v2 }
  0xca   :  { %862 = vmatpush1.bf16.msra.mxu1 %v925_v1 }
  0xcb   :  { %855 = vmatprep.subr.bf16.mxu1 %v930_v2 }
  0xcc   :  { %647 = vmatpush1.bf16.msra.mxu0 %v928_v3 }
  0xcd   :  { %648 = vmatprep.subr.bf16.mxu0 %v933_v0 }
  0xce   :  { %863 = vmatpush1.bf16.msra.mxu1 %v928_v3 }
  0xcf   :  { %856 = vmatprep.subr.bf16.mxu1 %v933_v0 }
  0xd0   :  { %649 = vmatpush1.bf16.msra.mxu0 %v931_v4 }
  0xd2   :  { %864 = vmatpush1.bf16.msra.mxu1 %v931_v4 }
 0x186   :  { %v809_v5 = vpop.f32.mrb[0].mxu0 }
 0x187   :  { %v837_v6 = vpop.f32.mrb[0].mxu1  ;;  %v810_v7 = vpop.f32.mrb[1].mxu0 }
 0x188   :  { %v811_v8 = vadd.f32 %v810_v7, %v809_v5  ;;  %v838_v9 = vpop.f32.mrb[1].mxu1  ;;  %v812_v10 = vpop.f32.mrb[2].mxu0 }
 0x189   :  { %v839_v11 = vadd.f32 %v838_v9, %v837_v6  ;;  %v840_v12 = vpop.f32.mrb[2].mxu1  ;;  %v813_v13 = vpop.f32.mrb[3].mxu0 }
 0x18a   :  { %v814_v14 = vadd.f32 %v813_v13, %v812_v10  ;;  %v841_v15 = vpop.f32.mrb[3].mxu1 }
 0x18b   :  { %v522_v16 = vadd.f32 %v839_v11, %v811_v8  ;;  %v842_v17 = vadd.f32 %v841_v15, %v840_v12 }
 0x18d   :  { %v525_v18 = vadd.f32 %v842_v17, %v814_v14 }
 0x18e   :  { %v815_v19 = vpop.f32.mrb[4].mxu0 }
 0x18f   :  { %v536_v20 = vpack.c.bf16 %v525_v18, %v522_v16  ;;  %v843_v21 = vpop.f32.mrb[4].mxu1  ;;  %v816_v22 = vpop.f32.mrb[5].mxu0 }
 0x190   :  { %v817_v23 = vadd.f32 %v816_v22, %v815_v19  ;;  %v844_v24 = vpop.f32.mrb[5].mxu1  ;;  %v818_v25 = vpop.f32.mrb[6].mxu0 }
 0x191   :  { %v845_v26 = vadd.f32 %v844_v24, %v843_v21  ;;  %v846_v27 = vpop.f32.mrb[6].mxu1  ;;  %667 = vmatmul.mubr.bf16.vlgmr.msra.gmra.mrb[8].mxu0 %v536_v20  ;;  %v819_v28 = vpop.f32.mrb[7].mxu0 }
 0x192   :  { %v820_v29 = vadd.f32 %v819_v28, %v818_v25  ;;  %v847_v30 = vpop.f32.mrb[7].mxu1 }
 0x193   :  { %v530_v31 = vadd.f32 %v845_v26, %v817_v23  ;;  %v848_v32 = vadd.f32 %v847_v30, %v846_v27 }
 0x195   :  { %v533_v33 = vadd.f32 %v848_v32, %v820_v29 }
 0x197   :  { %v537_v34 = vpack.c.bf16 %v533_v33, %v530_v31 }
 0x199   :  { %677 = vmatmul.mubr.bf16.vlgmr.msra.gmra.mrb[8].mxu1 %v537_v34 }
 0x264   :  { %v668_v35 = vpop.f32.mrb[8].mxu0 }
 0x265   :  { %687 = vst [vmem:[#allocation7] sm:$0xff] %v668_v35  ;;  %v670_v36 = vpop.f32.mrb[9].mxu0 }
 0x266   :  { %688 = vst [vmem:[#allocation7 + $0x8] sm:$0xff] %v670_v36  ;;  %v672_v37 = vpop.f32.mrb[10].mxu0 }
 0x267   :  { %689 = vst [vmem:[#allocation7 + $0x10] sm:$0xff] %v672_v37  ;;  %v674_v38 = vpop.f32.mrb[11].mxu0 }
 0x268   :  { %690 = vst [vmem:[#allocation7 + $0x18] sm:$0xff] %v674_v38 }
 0x26c   :  { %v678_v39 = vpop.f32.mrb[8].mxu1 }
 0x26d   :  { %691 = vst [vmem:[#allocation7 + $0x20] sm:$0xff] %v678_v39  ;;  %v680_v40 = vpop.f32.mrb[9].mxu1 }
 0x26e   :  { %692 = vst [vmem:[#allocation7 + $0x28] sm:$0xff] %v680_v40  ;;  %v682_v41 = vpop.f32.mrb[10].mxu1 }
 0x26f   :  { %693 = vst [vmem:[#allocation7 + $0x30] sm:$0xff] %v682_v41  ;;  %v684_v42 = vpop.f32.mrb[11].mxu1 }
 0x270   :  { %694 = vst [vmem:[#allocation7 + $0x38] sm:$0xff] %v684_v42 }
 0x271   :  { %989 = shalt.err (!%p986_p6)
}
 0x272   :  { %s990_s23 = scalar_lea.hbm %s1094_s3, 1024 }
 0x273   :  { %p991_p7 = scmp.ne.s32.totalorder %s1094_s3, %s990_s23  ;;  %p994_p8 = scmp.lt.u32.totalorder %s990_s23, %s1094_s3 }
 0x275   :  { %p996_p9 = pnand %p994_p8, %p991_p7 }
 0x277   :  { %999 = shalt.err (!%p996_p9)
}
 0x278   :  { %s1015_s28 = smov 256   ;;  %s1016_s29 = smov 16  }
 0x279   :  { %706 = dma.vmem_to_hbm [thread:$0]  %s701_s19, 1024, %s1094_s3, [#allocation4], %s1015_s28, %s1015_s28, %s1016_s29  }
 0x27a   :  { %1004 = dma.done.wait [#allocation4], 1024  }
 0x27b   :  { %1005 = vsyncadd [#allocation4], 4294966272 }
 0x27c   :  { %710 = vsyncpa [#allocation3], 1 }
 0x27d   :  { %711 = vsyncpa [#allocation6], 1 }
 0x27e   :  { %712 = vsyncpa [#allocation4], 1 }

</bundles_post_ra>
